<compile_context>
chip_gen: v6e
topology: v6e:2x2x1
jax: 0.10.0
libtpu: 0.0.40
codegen_flags: <defaults>
</compile_context>

<pallas_src>
import functools

import jax
import jax.numpy as jnp
from jax import lax
from jax.experimental import pallas as pl
from jax.experimental.pallas import tpu as pltpu

NORM_EPSILON = 1e-08


def _round_up(x, n):
    return ((x + n - 1) // n) * n


def _vmem_limit_bytes():
    """Generation-aware scoped-VMEM limit (v7x: 64 MiB/TC, v5e/v6e: 128 MiB)."""
    try:
        cap = int(getattr(pltpu.get_tpu_info(), "vmem_capacity_bytes", 0))
        if cap > 0:
            return min((cap * 3) // 4, 96 * 1024 * 1024)
    except Exception:
        pass
    return 32 * 1024 * 1024  # conservative fallback, safe on every generation


def _pick_tile(padded_dim, cap, align):
    """Largest multiple of `align` <= cap that divides padded_dim (no extra pad)."""
    cap = max(align, (min(cap, padded_dim) // align) * align)
    best = align
    t = align
    while t <= cap:
        if padded_dim % t == 0:
            best = t
        t += align
    return best


def _cap_tile_by_vmem(padded_dim, cap, per_elem_bytes, fixed_bytes, vmem_limit):
    """Shrink a lane-dim tile so the double-buffered footprint stays in budget."""
    budget = max(128 * per_elem_bytes, int(vmem_limit * 0.6) - fixed_bytes)
    max_elems = max(128, (budget // max(per_elem_bytes, 1)) // 128 * 128)
    return _pick_tile(padded_dim, min(cap, max_elems), 128)


# ---------------------------------------------------------------------------
# Pass 1 (two-pass path): normalized-weight kernel, weight streamed once.
# ---------------------------------------------------------------------------
def _normalize_weight_kernel(j_ref, w_ref, wmag_ref, o_ref):
    j = j_ref[0]
    w_all = w_ref[...]                                   # (m, tn, tk) f32
    w_norm = jnp.sqrt(jnp.sum(w_all * w_all, axis=0))    # (tn, tk)
    inv = pl.reciprocal(w_norm + NORM_EPSILON)           # exact (1e-5 budget)
    o_ref[...] = (w_ref[j] * inv * wmag_ref[...]).astype(o_ref.dtype)


# ---------------------------------------------------------------------------
# Pass 2 (two-pass path): tiled matmul + bias add, K last / arbitrary.
# ---------------------------------------------------------------------------
def _matmul_kernel(x_ref, w_ref, bn_ref, o_ref, *maybe_acc, cast_bf16=False):
    acc_ref = maybe_acc[0] if maybe_acc else o_ref       # f32 output: acc in place
    k = pl.program_id(2)

    @pl.when(k == 0)
    def _init():
        acc_ref[...] = jnp.zeros_like(acc_ref)

    x = x_ref[...]
    if cast_bf16:
        x = x.astype(jnp.bfloat16)
    # x: (tm, tk), w: (tn, tk) -> contract last dims of both; no explicit w.T.
    acc_ref[...] += lax.dot_general(
        x, w_ref[...],
        dimension_numbers=(((1,), (1,)), ((), ())),
        preferred_element_type=jnp.float32,
    )

    @pl.when(k == pl.num_programs(2) - 1)
    def _finalize():
        o_ref[...] = (acc_ref[...] + bn_ref[...]).astype(o_ref.dtype)


# ---------------------------------------------------------------------------
# Fused path (single batch tile): normalize + matmul in one kernel, no
# w_normed HBM round trip.
# ---------------------------------------------------------------------------
def _fused_norm_matmul_kernel(j_ref, x_ref, w_ref, wmag_ref, bn_ref, o_ref,
                              *maybe_acc, cast_bf16=False):
    acc_ref = maybe_acc[0] if maybe_acc else o_ref
    k = pl.program_id(1)

    @pl.when(k == 0)
    def _init():
        acc_ref[...] = jnp.zeros_like(acc_ref)

    j = j_ref[0]
    w_all = w_ref[...]                                   # (m, tn, tk)
    w_norm = jnp.sqrt(jnp.sum(w_all * w_all, axis=0))    # (tn, tk)
    inv = pl.reciprocal(w_norm + NORM_EPSILON)
    wn = w_ref[j] * inv * wmag_ref[...]                  # (tn, tk) normalized
    x = x_ref[...]
    if cast_bf16:
        wn = wn.astype(jnp.bfloat16)
        x = x.astype(jnp.bfloat16)
    acc_ref[...] += lax.dot_general(
        x, wn,
        dimension_numbers=(((1,), (1,)), ((), ())),
        preferred_element_type=jnp.float32,
    )

    @pl.when(k == pl.num_programs(1) - 1)
    def _finalize():
        o_ref[...] = (acc_ref[...] + bn_ref[...]).astype(o_ref.dtype)


# ---------------------------------------------------------------------------
# Wrapper
# ---------------------------------------------------------------------------
def multi_linear_forward(x, weight, weight_mag, bias, bias_mag, j,
                         is_variance=False, use_bf16_matmul=False):
    """Forward of the SharedMagnitude Linear for sub-model `j`."""
    del is_variance  # only changes autodiff behavior, not the forward value
    m, out_dim, in_dim = weight.shape
    lead = x.shape[:-1]
    out_dtype = x.dtype
    f32 = jnp.float32

    x2 = x.reshape(-1, in_dim).astype(f32)
    B = x2.shape[0]

    vmem_limit = _vmem_limit_bytes()

    # ---- minimally aligned extents, tiles chosen as divisors (avoid padding) ----
    in_p = _round_up(in_dim, 128)
    out_p = _round_up(out_dim, 128)
    B_p = _round_up(B, 8)

    tn = _pick_tile(out_p, 512, 128)
    tk = _pick_tile(in_p, 1024, 128)
    tm = _pick_tile(B_p, 512, 8)
    if tm < 128 <= B_p:
        # Awkward batch sizes: prefer modest zero-padding over tiny row tiles.
        tm = min(512, _round_up(B_p, 128)) if B_p <= 512 else 256
        B_p = _round_up(B, tm)

    # ---- pad only when strictly needed (zero pad is norm- and matmul-safe) ----
    if (B_p, in_p) != (B, in_dim):
        x_p = jnp.zeros((B_p, in_p), f32).at[:B, :in_dim].set(x2)
    else:
        x_p = x2

    w_f32 = weight.astype(f32)
    wmag_f32 = weight_mag.astype(f32)
    if (out_p, in_p) != (out_dim, in_dim):
        w_p = jnp.zeros((m, out_p, in_p), f32).at[:, :out_dim, :in_dim].set(w_f32)
        wmag_p = jnp.zeros((out_p, in_p), f32).at[:out_dim, :in_dim].set(wmag_f32)
    else:
        w_p = w_f32
        wmag_p = wmag_f32

    # ---- bias normalization is tiny (m*out): do it once in the wrapper ----
    b_f32 = bias.astype(f32)
    b_norm = jnp.sqrt(jnp.sum(b_f32 * b_f32, axis=0))
    b_normed = b_f32[j] / (b_norm + NORM_EPSILON) * bias_mag.astype(f32)  # (out,)
    if out_p != out_dim:
        bn_p = jnp.zeros((1, out_p), f32).at[0, :out_dim].set(b_normed)
    else:
        bn_p = b_normed.reshape(1, out_p)

    j_arr = jnp.asarray([j], dtype=jnp.int32)
    out_is_f32 = (x.dtype == jnp.float32)
    acc_scratch = [] if out_is_f32 else [pltpu.VMEM((tm, tn), jnp.float32)]

    if B_p == tm:
        # ----- fused path: single batch tile, skip the w_normed intermediate -----
        if out_p // tn == 1 and out_p >= 256:
            # v7x has 2 TCs sharded over parallel axes: give jo >= 2 blocks.
            tn = _pick_tile(out_p, max(128, tn // 2), 128)
            acc_scratch = [] if out_is_f32 else [pltpu.VMEM((tm, tn), jnp.float32)]
        per_tk = 8 * (m * tn + tn + tm)          # raw w + wmag + x (f32, dbl-buffered)
        fixed = 8 * tm * tn + 8 * tn             # output tile + bias
        tk_f = _cap_tile_by_vmem(in_p, tk, per_tk, fixed, vmem_limit)

        kernel = functools.partial(_fused_norm_matmul_kernel,
                                   cast_bf16=use_bf16_matmul)
        y_p = pl.pallas_call(
            kernel,
            out_shape=jax.ShapeDtypeStruct((B_p, out_p), out_dtype),
            grid_spec=pltpu.PrefetchScalarGridSpec(
                num_scalar_prefetch=1,                          # j lives in SMEM
                grid=(out_p // tn, in_p // tk_f),
                in_specs=[
                    pl.BlockSpec((tm, tk_f), lambda jo, k, jr: (0, k)),        # x
                    pl.BlockSpec((m, tn, tk_f), lambda jo, k, jr: (0, jo, k)),  # raw w
                    pl.BlockSpec((tn, tk_f), lambda jo, k, jr: (jo, k)),        # w_mag
                    pl.BlockSpec((1, tn), lambda jo, k, jr: (0, jo)),           # bias
                ],
                out_specs=pl.BlockSpec((tm, tn), lambda jo, k, jr: (0, jo)),
                scratch_shapes=acc_scratch,
            ),
            compiler_params=pltpu.CompilerParams(
                dimension_semantics=("parallel", "arbitrary"),
                vmem_limit_bytes=vmem_limit,
            ),
        )(j_arr, x_p, w_p, wmag_p, bn_p)
    else:
        # ----- two-pass path: normalize once, then K-last accumulator matmul -----
        w_dtype = jnp.bfloat16 if use_bf16_matmul else f32
        w_bytes = 2 if use_bf16_matmul else 4

        # Pass 1: (m, tn, tk1) weight block double-buffered; cap tk1 by VMEM.
        per_tk1 = 8 * tn * (m + 1) + 2 * w_bytes * tn
        tk1 = _cap_tile_by_vmem(in_p, 1024, per_tk1, 0, vmem_limit)
        w_normed = pl.pallas_call(
            _normalize_weight_kernel,
            out_shape=jax.ShapeDtypeStruct((out_p, in_p), w_dtype),
            grid_spec=pltpu.PrefetchScalarGridSpec(
                num_scalar_prefetch=1,
                grid=(out_p // tn, in_p // tk1),
                in_specs=[
                    pl.BlockSpec((m, tn, tk1), lambda io, ik, jr: (0, io, ik)),
                    pl.BlockSpec((tn, tk1), lambda io, ik, jr: (io, ik)),
                ],
                out_specs=pl.BlockSpec((tn, tk1), lambda io, ik, jr: (io, ik)),
            ),
            compiler_params=pltpu.CompilerParams(
                dimension_semantics=("parallel", "parallel"),
                vmem_limit_bytes=vmem_limit,
            ),
        )(j_arr, w_p, wmag_p)

        # Pass 2: tiled matmul + bias add (f32 accumulation, K last / arbitrary).
        per_tk2 = 8 * tm + 2 * w_bytes * tn
        fixed2 = 8 * tm * tn + 8 * tn
        tk2 = _cap_tile_by_vmem(in_p, tk, per_tk2, fixed2, vmem_limit)
        kernel = functools.partial(_matmul_kernel, cast_bf16=use_bf16_matmul)
        y_p = pl.pallas_call(
            kernel,
            out_shape=jax.ShapeDtypeStruct((B_p, out_p), out_dtype),
            grid=(B_p // tm, out_p // tn, in_p // tk2),
            in_specs=[
                pl.BlockSpec((tm, tk2), lambda i, jo, k: (i, k)),   # x
                pl.BlockSpec((tn, tk2), lambda i, jo, k: (jo, k)),  # normed w
                pl.BlockSpec((1, tn), lambda i, jo, k: (0, jo)),    # normed bias
            ],
            out_specs=pl.BlockSpec((tm, tn), lambda i, jo, k: (i, jo)),
            scratch_shapes=acc_scratch,
            compiler_params=pltpu.CompilerParams(
                dimension_semantics=("parallel", "parallel", "arbitrary"),
                vmem_limit_bytes=vmem_limit,
            ),
        )(x_p, w_normed, bn_p)

    return y_p[:B, :out_dim].reshape(lead + (out_dim,))


# ---------------------------------------------------------------------------
# Param creation (mirrors create_linear_params / create_normed_params)
# ---------------------------------------------------------------------------
def create_linear_params(key, m, in_dim, out_dim):
    kw, kb = jax.random.split(key)
    scaler = 1.0 / (in_dim ** 0.5)
    weight = 2.0 * (jax.random.uniform(kw, (m, out_dim, in_dim), jnp.float32) - 0.5) * scaler
    bias = 2.0 * (jax.random.uniform(kb, (m, out_dim), jnp.float32) - 0.5) * scaler
    weight_mag = jnp.sqrt(jnp.sum(weight ** 2, axis=0))   # norm2 over model axis
    bias_mag = jnp.sqrt(jnp.sum(bias ** 2, axis=0))
    return weight, bias, weight_mag, bias_mag


def _reference_forward(x, weight, weight_mag, bias, bias_mag, j):
    """Plain-JAX reference mirroring the PyTorch math."""
    w_norm = jnp.sqrt(jnp.sum(weight ** 2, axis=0))
    b_norm = jnp.sqrt(jnp.sum(bias ** 2, axis=0))
    w = weight[j] / (w_norm + NORM_EPSILON) * weight_mag
    b = bias[j] / (b_norm + NORM_EPSILON) * bias_mag
    return x @ w.T + b


if __name__ == "__main__":
    key = jax.random.PRNGKey(0)
    k_param, k_x, k_param2, k_x2 = jax.random.split(key, 4)

    # --- small case (module-scale shapes): exercises the fused single-tile path ---
    m, in_dim, out_dim = 3, 32, 16
    batch, seq = 2, 8
    j = 1
    weight, bias, weight_mag, bias_mag = create_linear_params(k_param, m, in_dim, out_dim)
    x = jax.random.normal(k_x, (batch, seq, in_dim), jnp.float32)

    y = multi_linear_forward(x, weight, weight_mag, bias, bias_mag, j, is_variance=False)
    y = jax.block_until_ready(y)
    y_ref = _reference_forward(x, weight, weight_mag, bias, bias_mag, j)
    assert y.shape == (batch, seq, out_dim)
    assert jnp.allclose(y, y_ref, atol=1e-5, rtol=1e-5), float(jnp.max(jnp.abs(y - y_ref)))

    # --- larger batch with awkward dims: exercises padding + the two-pass path ---
    m2, in2, out2 = 4, 96, 200
    B2 = 520
    j2 = 2
    w2, b2, wmag2, bmag2 = create_linear_params(k_param2, m2, in2, out2)
    x2 = jax.random.normal(k_x2, (B2, in2), jnp.float32)

    y2 = multi_linear_forward(x2, w2, wmag2, b2, bmag2, j2, is_variance=False)
    y2 = jax.block_until_ready(y2)
    y2_ref = _reference_forward(x2, w2, wmag2, b2, bmag2, j2)
    assert y2.shape == (B2, out2)
    assert jnp.allclose(y2, y2_ref, atol=1e-5, rtol=1e-5), float(jnp.max(jnp.abs(y2 - y2_ref)))

    print("KERNEL_OK")
</pallas_src>

<mosaic_0001>
module attributes {stable_mosaic.version = 11 : i64} {
  func.func @_fused_norm_matmul_kernel(%arg0: i32, %arg1: i32, %arg2: memref<1xi32, #tpu.memory_space<smem>>, %arg3: memref<16x128xf32, #tpu.memory_space<vmem>>, %arg4: memref<3x128x128xf32, #tpu.memory_space<vmem>>, %arg5: memref<128x128xf32, #tpu.memory_space<vmem>>, %arg6: memref<1x128xf32, #tpu.memory_space<vmem>>, %arg7: memref<16x128xf32, #tpu.memory_space<vmem>>) attributes {dimension_semantics = [#tpu.dimension_semantics<parallel>, #tpu.dimension_semantics<arbitrary>], iteration_bounds = array<i64: 1, 1>, scalar_prefetch = 1 : i64, scratch_operands = 0 : i64, tpu.core_type = #tpu.core_type<tc>, window_params = [{transform_indices = @transform_0, window_bounds = array<i64: 16, 128>}, {transform_indices = @transform_1, window_bounds = array<i64: 3, 128, 128>}, {transform_indices = @transform_2, window_bounds = array<i64: 128, 128>}, {transform_indices = @transform_3, window_bounds = array<i64: 1, 128>}, {transform_indices = @transform_4, window_bounds = array<i64: 16, 128>}]} {
    %c0_i32 = arith.constant 0 : i32
    %0 = arith.cmpi eq, %arg1, %c0_i32 : i32
    %1 = arith.extui %0 : i1 to i32
    %c0_i32_0 = arith.constant 0 : i32
    %2 = arith.cmpi ne, %1, %c0_i32_0 : i32
    scf.if %2 {
      %cst_18 = arith.constant 0.000000e+00 : f32
      %25 = vector.broadcast %cst_18 : f32 to vector<16x128xf32>
      %c0_19 = arith.constant 0 : index
      %c0_20 = arith.constant 0 : index
      %26 = vector.load %arg7[%c0_19, %c0_20] : memref<16x128xf32, #tpu.memory_space<vmem>>, vector<16x128xf32>
      tpu.vector_store %arg7[%c0_19, %c0_20], %25 {strides = array<i32>} : memref<16x128xf32, #tpu.memory_space<vmem>>, vector<16x128xf32>,
    } else {
    }
    %c0 = arith.constant 0 : index
    %3 = memref.load %arg2[%c0] : memref<1xi32, #tpu.memory_space<smem>>
    %c0_1 = arith.constant 0 : index
    %c0_2 = arith.constant 0 : index
    %c0_3 = arith.constant 0 : index
    %4 = vector.load %arg4[%c0_1, %c0_2, %c0_3] : memref<3x128x128xf32, #tpu.memory_space<vmem>>, vector<3x128x128xf32>
    %5 = arith.mulf %4, %4 : vector<3x128x128xf32>
    %cst = arith.constant dense<0.000000e+00> : vector<128x128xf32>
    %6 = vector.multi_reduction <add>, %5, %cst [0] : vector<3x128x128xf32> to vector<128x128xf32>
    %7 = math.sqrt %6 : vector<128x128xf32>
    %cst_4 = arith.constant 9.99999993E-9 : f32
    %8 = vector.broadcast %cst_4 : f32 to vector<128x128xf32>
    %9 = arith.addf %7, %8 : vector<128x128xf32>
    %10 = tpu.reciprocal %9 : vector<128x128xf32> -> vector<128x128xf32>
    %11 = arith.index_cast %3 : i32 to index
    %c0_5 = arith.constant 0 : index
    %c0_6 = arith.constant 0 : index
    %12 = vector.load %arg4[%11, %c0_5, %c0_6] : memref<3x128x128xf32, #tpu.memory_space<vmem>>, vector<1x128x128xf32>
    %13 = vector.shape_cast %12 : vector<1x128x128xf32> to vector<128x128xf32>
    %14 = arith.mulf %13, %10 : vector<128x128xf32>
    %c0_7 = arith.constant 0 : index
    %c0_8 = arith.constant 0 : index
    %15 = vector.load %arg5[%c0_7, %c0_8] : memref<128x128xf32, #tpu.memory_space<vmem>>, vector<128x128xf32>
    %16 = arith.mulf %14, %15 : vector<128x128xf32>
    %c0_9 = arith.constant 0 : index
    %c0_10 = arith.constant 0 : index
    %17 = vector.load %arg3[%c0_9, %c0_10] : memref<16x128xf32, #tpu.memory_space<vmem>>, vector<16x128xf32>
    %c0_11 = arith.constant 0 : index
    %c0_12 = arith.constant 0 : index
    %18 = vector.load %arg7[%c0_11, %c0_12] : memref<16x128xf32, #tpu.memory_space<vmem>>, vector<16x128xf32>
    %cst_13 = arith.constant dense<0.000000e+00> : vector<16x128xf32>
    %19 = tpu.matmul %17, %16, %cst_13 {dimension_numbers = #tpu.dot_dimension_numbers<[1], [1], [0], [0], [0, 0, 1, 0], [], []>} : vector<16x128xf32>, vector<128x128xf32>, vector<16x128xf32> -> vector<16x128xf32>
    %20 = arith.addf %18, %19 : vector<16x128xf32>
    %c0_14 = arith.constant 0 : index
    %c0_15 = arith.constant 0 : index
    %21 = vector.load %arg7[%c0_14, %c0_15] : memref<16x128xf32, #tpu.memory_space<vmem>>, vector<16x128xf32>
    tpu.vector_store %arg7[%c0_14, %c0_15], %20 {strides = array<i32>} : memref<16x128xf32, #tpu.memory_space<vmem>>, vector<16x128xf32>,
    %c0_i32_16 = arith.constant 0 : i32
    %22 = arith.cmpi eq, %arg1, %c0_i32_16 : i32
    %23 = arith.extui %22 : i1 to i32
    %c0_i32_17 = arith.constant 0 : i32
    %24 = arith.cmpi ne, %23, %c0_i32_17 : i32
    scf.if %24 {
      %c0_18 = arith.constant 0 : index
      %c0_19 = arith.constant 0 : index
      %25 = vector.load %arg7[%c0_18, %c0_19] : memref<16x128xf32, #tpu.memory_space<vmem>>, vector<16x128xf32>
      %c0_20 = arith.constant 0 : index
      %c0_21 = arith.constant 0 : index
      %26 = vector.load %arg6[%c0_20, %c0_21] : memref<1x128xf32, #tpu.memory_space<vmem>>, vector<1x128xf32>
      %27 = vector.broadcast %26 : vector<1x128xf32> to vector<16x128xf32>
      %28 = arith.addf %25, %27 : vector<16x128xf32>
      %c0_22 = arith.constant 0 : index
      %c0_23 = arith.constant 0 : index
      %29 = vector.load %arg7[%c0_22, %c0_23] : memref<16x128xf32, #tpu.memory_space<vmem>>, vector<16x128xf32>
      tpu.vector_store %arg7[%c0_22, %c0_23], %28 {strides = array<i32>} : memref<16x128xf32, #tpu.memory_space<vmem>>, vector<16x128xf32>,
    } else {
    }
    return
  }
  func.func @transform_0(%arg0: i32, %arg1: i32, %arg2: memref<1xi32, #tpu.memory_space<smem>>) -> (i32, i32) {
    %c0_i32 = arith.constant 0 : i32
    %c0_i32_0 = arith.constant 0 : i32
    return %c0_i32, %arg1 : i32, i32
  }
  func.func @transform_1(%arg0: i32, %arg1: i32, %arg2: memref<1xi32, #tpu.memory_space<smem>>) -> (i32, i32, i32) {
    %c0_i32 = arith.constant 0 : i32
    %c0_i32_0 = arith.constant 0 : i32
    return %c0_i32, %arg0, %arg1 : i32, i32, i32
  }
  func.func @transform_2(%arg0: i32, %arg1: i32, %arg2: memref<1xi32, #tpu.memory_space<smem>>) -> (i32, i32) {
    %c0_i32 = arith.constant 0 : i32
    return %arg0, %arg1 : i32, i32
  }
  func.func @transform_3(%arg0: i32, %arg1: i32, %arg2: memref<1xi32, #tpu.memory_space<smem>>) -> (i32, i32) {
    %c0_i32 = arith.constant 0 : i32
    %c0_i32_0 = arith.constant 0 : i32
    return %c0_i32, %arg0 : i32, i32
  }
  func.func @transform_4(%arg0: i32, %arg1: i32, %arg2: memref<1xi32, #tpu.memory_space<smem>>) -> (i32, i32) {
    %c0_i32 = arith.constant 0 : i32
    %c0_i32_0 = arith.constant 0 : i32
    return %c0_i32, %arg0 : i32, i32
  }
}

</mosaic_0001>

<bundles_post_ra>
// kernel: tpu_custom_call.1
= control target key start
LH: loop header
LB: loop body
LE: loop exit
PB: predicated region body
PF: predicated region fallthrough
CT: control target
= control target key end

     0   :  { %11 = vsyncpa [#allocation5], 0  ;;  %s1003_s0 = inlined_call_operand.<no memory space> [shape: s32[1], index: 0, kind: input, shape index: {}]   ;;  %s1004_s1 = inlined_call_operand.hbm [shape: f32[16,128], index: 1, kind: input, shape index: {}]   ;;  %s1005_s2 = inlined_call_operand.hbm [shape: f32[3,128,128], index: 2, kind: input, shape index: {}]   ;;  %s1006_s3 = inlined_call_operand.hbm [shape: f32[128,128], index: 3, kind: input, shape index: {}]   ;;  %s1007_s4 = inlined_call_operand.vmem [shape: f32[1,128], index: 4, kind: input, shape index: {}]   ;;  %s1008_s5 = inlined_call_operand.hbm [shape: f32[16,128], index: 5, kind: output, shape index: {}]  }
   0x1   :  { %12 = vsyncpa [#allocation8], 0 }
   0x2   :  { %13 = vsyncpa [#allocation6], 0  ;;  %s737_s18 = smov [#allocation7]   ;;  %s738_s20 = smov [#allocation4]  }
   0x3   :  { %s31_s19 = sshll.u32 %s737_s18, 4  ;;  %s19_s21 = sshll.u32 %s738_s20, 4  ;;  %s32_s19 = int_to_ptr.vmem [resolvable:$true] %s31_s19  ;;  %s20_s21 = int_to_ptr.vmem [resolvable:$true] %s19_s21 }
   0x4   :  { %s659_s22 = scalar_lea.vmem %s32_s19, 6144  ;;  %p664_p1 = scmp.lt.s32.totalorder %s32_s19, %s32_s19 }
   0x5   :  { %p660_p0 = scmp.ne.s32.totalorder %s32_s19, %s659_s22  ;;  %p665_p2 = scmp.lt.s32.totalorder %s659_s22, %s659_s22 }
   0x7   :  { %p666_p3 = por %p665_p2, %p664_p1 }
   0x9   :  { %p667_p4 = pnand %p666_p3, %p660_p0 }
   0xb   :  { %670 = shalt.err (!%p667_p4)
}
   0xc   :  { %s739_s23 = smov 128   ;;  %s740_s24 = smov 8  }
   0xd   :  { %37 = dma.hbm_to_vmem [thread:$0]  %s1005_s2, 6144, %s32_s19, [#allocation8], %s739_s23, %s739_s23, %s740_s24  }
   0xe   :  { %s679_s27 = scalar_lea.vmem %s20_s21, 256  ;;  %p684_p6 = scmp.lt.s32.totalorder %s20_s21, %s20_s21 }
   0xf   :  { %p680_p5 = scmp.ne.s32.totalorder %s20_s21, %s679_s27  ;;  %p685_p7 = scmp.lt.s32.totalorder %s679_s27, %s679_s27 }
  0x11   :  { %p686_p8 = por %p685_p7, %p684_p6 }
  0x13   :  { %p687_p9 = pnand %p686_p8, %p680_p5 }
  0x15   :  { %690 = shalt.err (!%p687_p9)
}
  0x16   :  { %25 = dma.hbm_to_vmem [thread:$0]  %s1004_s1, 256, %s20_s21, [#allocation5], %s739_s23, %s739_s23, %s740_s24  }
  0x17   :  { %s741_s30 = smov [#allocation9]  }
  0x18   :  { %s43_s6 = sshll.u32 %s741_s30, 4  ;;  %s44_s6 = int_to_ptr.vmem [resolvable:$true] %s43_s6 }
  0x19   :  { %s699_s7 = scalar_lea.vmem %s44_s6, 2048  ;;  %p704_p11 = scmp.lt.s32.totalorder %s44_s6, %s44_s6 }
  0x1a   :  { %p700_p10 = scmp.ne.s32.totalorder %s44_s6, %s699_s7  ;;  %p705_p12 = scmp.lt.s32.totalorder %s699_s7, %s699_s7 }
  0x1c   :  { %p706_p13 = por %p705_p12, %p704_p11 }
  0x1e   :  { %p707_p0 = pnand %p706_p13, %p700_p10 }
  0x20   :  { %710 = shalt.err (!%p707_p0)
}
  0x21   :  { %49 = dma.hbm_to_vmem [thread:$0]  %s1006_s3, 2048, %s44_s6, [#allocation8], %s739_s23, %s739_s23, %s740_s24  }
  0x22   :  { %731 = dma.done.wait [#allocation5], 256  }
  0x23   :  { %732 = vsyncadd [#allocation5], 4294967040 }
  0x24   :  { %733 = dma.done.wait [#allocation8], 8192  }
  0x25   :  { %734 = vsyncadd [#allocation8], 4294959104  ;;  %v83_v0 = vld [vmem:[#allocation7 + $0x78] sm:$0xff]  ;;  %v82_v6 = vld [vmem:[#allocation7 + $0x70] sm:$0xff]  ;;  %s525_s9 = sshll.u32 %s1003_s0, 7  ;;  %s742_s14 = smov [#allocation10]  }
  0x26   :  { %v99_v1 = vld [vmem:[#allocation7 + $0xf8] sm:$0xff]  ;;  %v131_v3 = vmul.f32 %v83_v0, %v83_v0  ;;  %v98_v7 = vld [vmem:[#allocation7 + $0xf0] sm:$0xff]  ;;  %v130_v9 = vmul.f32 %v82_v6, %v82_v6  ;;  %v81_v12 = vld [vmem:[#allocation7 + $0x68] sm:$0xff]  ;;  %s898_s12 = scalar_lea.vmem [#allocation7], %s525_s9  ;;  %s510_s15 = sshll.u32 %s742_s14, 4  ;;  %s511_s15 = int_to_ptr.vmem [resolvable:$true] %s510_s15 }
  0x27   :  { %v115_v2 = vld [vmem:[#allocation7 + $0x178] sm:$0xff]  ;;  %v147_v4 = vmul.f32 %v99_v1, %v99_v1  ;;  %v114_v8 = vld [vmem:[#allocation7 + $0x170] sm:$0xff]  ;;  %v146_v11 = vmul.f32 %v98_v7, %v98_v7  ;;  %v97_v13 = vld [vmem:[#allocation7 + $0xe8] sm:$0xff]  ;;  %v129_v16 = vmul.f32 %v81_v12, %v81_v12  ;;  %s711_s16 = scalar_lea.vmem %s511_s15, 256  ;;  %p716_p2 = scmp.lt.s32.totalorder %s511_s15, %s511_s15 }
  0x28   :  { %v163_v5 = vmul.f32 %v115_v2, %v115_v2  ;;  %v162_v14 = vmul.f32 %v114_v8, %v114_v8  ;;  %v113_v15 = vld [vmem:[#allocation7 + $0x168] sm:$0xff]  ;;  %v145_v17 = vmul.f32 %v97_v13, %v97_v13  ;;  %v80_v21 = vld [vmem:[#allocation7 + $0x60] sm:$0xff]  ;;  %v79_v27 = vld [vmem:[#allocation7 + $0x58] sm:$0xff]  ;;  %p712_p1 = scmp.ne.s32.totalorder %s511_s15, %s711_s16  ;;  %p717_p3 = scmp.lt.s32.totalorder %s711_s16, %s711_s16 }
  0x29   :  { %v194_v10 = vadd.f32 %v147_v4, %v131_v3  ;;  %v192_v19 = vadd.f32 %v146_v11, %v130_v9  ;;  %v161_v20 = vmul.f32 %v113_v15, %v113_v15  ;;  %v96_v22 = vld [vmem:[#allocation7 + $0xe0] sm:$0xff]  ;;  %v128_v25 = vmul.f32 %v80_v21, %v80_v21  ;;  %v95_v29 = vld [vmem:[#allocation7 + $0xd8] sm:$0xff]  ;;  %v78_v35 = vld [vmem:[#allocation7 + $0x50] sm:$0xff] }
  0x2a   :  { %v112_v23 = vld [vmem:[#allocation7 + $0x160] sm:$0xff]  ;;  %v190_v24 = vadd.f32 %v145_v17, %v129_v16  ;;  %v144_v26 = vmul.f32 %v96_v22, %v96_v22  ;;  %v111_v33 = vld [vmem:[#allocation7 + $0x158] sm:$0xff]  ;;  %v127_v34 = vmul.f32 %v79_v27, %v79_v27  ;;  %v94_v36 = vld [vmem:[#allocation7 + $0xd0] sm:$0xff]  ;;  %v143_v37 = vmul.f32 %v95_v29, %v95_v29  ;;  %p718_p4 = por %p717_p3, %p716_p2 }
  0x2b   :  { %v791_v18 = vadd.f32 %v194_v10, %v163_v5  ;;  %v160_v28 = vmul.f32 %v112_v23, %v112_v23  ;;  %v794_v30 = vadd.f32 %v192_v19, %v162_v14  ;;  %v110_v38 = vld [vmem:[#allocation7 + $0x150] sm:$0xff]  ;;  %v126_v39 = vmul.f32 %v78_v35, %v78_v35  ;;  %v77_v41 = vld [vmem:[#allocation7 + $0x48] sm:$0xff]  ;;  %v76_v45 = vld [vmem:[#allocation7 + $0x40] sm:$0xff] }
  0x2c   :  { %v796_v31 = vadd.f32 %v190_v24, %v161_v20  ;;  %v188_v32 = vadd.f32 %v144_v26, %v128_v25  ;;  %v142_v40 = vmul.f32 %v94_v36, %v94_v36  ;;  %v93_v42 = vld [vmem:[#allocation7 + $0xc8] sm:$0xff]  ;;  %v159_v43 = vmul.f32 %v111_v33, %v111_v33  ;;  %v92_v50 = vld [vmem:[#allocation7 + $0xc0] sm:$0xff]  ;;  %v75_v53 = vld [vmem:[#allocation7 + $0x38] sm:$0xff]  ;;  %p719_p5 = pnand %p718_p4, %p712_p1 }
  0x2d   :  { %587 = vrsqrt.f32 %v791_v18  ;;  %v109_v44 = vld [vmem:[#allocation7 + $0x148] sm:$0xff]  ;;  %v186_v47 = vadd.f32 %v143_v37, %v127_v34  ;;  %v158_v48 = vmul.f32 %v110_v38, %v110_v38  ;;  %vm303_vm0 = vcmp.eq.f32.partialorder %v791_v18, inf  ;;  %v91_v54 = vld [vmem:[#allocation7 + $0xb8] sm:$0xff]  ;;  %v108_v60 = vld [vmem:[#allocation7 + $0x140] sm:$0xff] }
  0x2e   :  { %589 = vrsqrt.f32 %v794_v30  ;;  %v800_v46 = vadd.f32 %v188_v32, %v160_v28  ;;  %v184_v49 = vadd.f32 %v142_v40, %v126_v39  ;;  %v125_v51 = vmul.f32 %v77_v41, %v77_v41  ;;  %v107_v62 = vld [vmem:[#allocation7 + $0x138] sm:$0xff]  ;;  %v74_v3 = vld [vmem:[#allocation7 + $0x30] sm:$0xff]  ;;  %v73_v7 = vld [vmem:[#allocation7 + $0x28] sm:$0xff] }
  0x2f   :  { %591 = vrsqrt.f32 %v796_v31  ;;  %v141_v52 = vmul.f32 %v93_v42, %v93_v42  ;;  %vm305_vm1 = vcmp.eq.f32.partialorder %v791_v18, 0.0  ;;  %v157_v55 = vmul.f32 %v109_v44, %v109_v44  ;;  %v90_v4 = vld [vmem:[#allocation7 + $0xb0] sm:$0xff]  ;;  %v89_v8 = vld [vmem:[#allocation7 + $0xa8] sm:$0xff]  ;;  %v88_v44 = vld [vmem:[#allocation7 + $0xa0] sm:$0xff] }
  0x30   :  { %593 = vrsqrt.f32 %v800_v46  ;;  %v124_v56 = vmul.f32 %v76_v45, %v76_v45  ;;  %v805_v57 = vadd.f32 %v186_v47, %v159_v43  ;;  %v807_v58 = vadd.f32 %v184_v49, %v158_v48  ;;  %v106_v14 = vld [vmem:[#allocation7 + $0x130] sm:$0xff]  ;;  %v105_v24 = vld [vmem:[#allocation7 + $0x128] sm:$0xff]  ;;  %v72_v43 = vld [vmem:[#allocation7 + $0x20] sm:$0xff] }
  0x31   :  { %v182_v59 = vadd.f32 %v141_v52, %v125_v51  ;;  %v140_v61 = vmul.f32 %v92_v50, %v92_v50  ;;  %v306_v63 = vand.u32 2147483648, %v791_v18  ;;  %vm296_vm2 = vcmp.eq.f32.partialorder %v794_v30, inf  ;;  %v406_v45 = vld [vmem:[#allocation4] sm:$0xff] }
  0x32   :  { %v123_v0 = vmul.f32 %v75_v53, %v75_v53  ;;  %v139_v1 = vmul.f32 %v91_v54, %v91_v54  ;;  %vm298_vm3 = vcmp.eq.f32.partialorder %v794_v30, 0.0  ;;  %v299_v2 = vand.u32 2147483648, %v794_v30  ;;  %577 = vmatprep.mubr.f32.mxu0 %v406_v45  ;;  %v104_v53 = vld [vmem:[#allocation7 + $0x120] sm:$0xff] }
  0x33   :  { %vm289_vm4 = vcmp.eq.f32.partialorder %v796_v31, inf  ;;  %595 = vrsqrt.f32 %v805_v57  ;;  %vm291_vm5 = vcmp.eq.f32.partialorder %v796_v31, 0.0  ;;  %v156_v5 = vmul.f32 %v108_v60, %v108_v60 }
  0x34   :  { %597 = vrsqrt.f32 %v807_v58  ;;  %v155_v6 = vmul.f32 %v107_v62, %v107_v62  ;;  %v292_v9 = vand.u32 2147483648, %v796_v31  ;;  %v818_v10 = vadd.f32 %v182_v59, %v157_v55 }
  0x35   :  { %v180_v11 = vadd.f32 %v140_v61, %v124_v56  ;;  %v178_v12 = vadd.f32 %v139_v1, %v123_v0  ;;  %vm282_vm6 = vcmp.eq.f32.partialorder %v800_v46, inf  ;;  %vm284_vm7 = vcmp.eq.f32.partialorder %v800_v46, 0.0 }
  0x36   :  { %v122_v15 = vmul.f32 %v74_v3, %v74_v3  ;;  %v138_v16 = vmul.f32 %v90_v4, %v90_v4  ;;  %599 = vrsqrt.f32 %v818_v10  ;;  %v121_v19 = vmul.f32 %v73_v7, %v73_v7  ;;  %v87_v3 = vld [vmem:[#allocation7 + $0x98] sm:$0xff] }
  0x37   :  { %v137_v20 = vmul.f32 %v89_v8, %v89_v8  ;;  %v285_v21 = vand.u32 2147483648, %v800_v46  ;;  %vm275_vm8 = vcmp.eq.f32.partialorder %v805_v57, inf  ;;  %v826_v22 = vadd.f32 %v180_v11, %v156_v5  ;;  %v70_v8 = vld [vmem:[#allocation7 + $0x10] sm:$0xff] }
  0x38   :  { %v828_v23 = vadd.f32 %v178_v12, %v155_v6  ;;  %vm277_vm9 = vcmp.eq.f32.partialorder %v805_v57, 0.0  ;;  %v278_v27 = vand.u32 2147483648, %v805_v57  ;;  %vm268_vm10 = vcmp.eq.f32.partialorder %v807_v58, inf }
  0x39   :  { %v154_v28 = vmul.f32 %v106_v14, %v106_v14  ;;  %601 = vrsqrt.f32 %v826_v22  ;;  %v176_v34 = vadd.f32 %v138_v16, %v122_v15  ;;  %v153_v37 = vmul.f32 %v105_v24, %v105_v24  ;;  %v103_v14 = vld [vmem:[#allocation7 + $0x118] sm:$0xff] }
  0x3a   :  { %v588_v13 = vpop.eup %587  ;;  %v174_v38 = vadd.f32 %v137_v20, %v121_v19  ;;  %vm270_vm11 = vcmp.eq.f32.partialorder %v807_v58, 0.0  ;;  %v271_v40 = vand.u32 2147483648, %v807_v58  ;;  %603 = vrsqrt.f32 %v828_v23 }
  0x3b   :  { %v302_v17 = vmul.f32 %v588_v13, %v791_v18  ;;  %v590_v25 = vpop.eup %589  ;;  %vm261_vm12 = vcmp.eq.f32.partialorder %v818_v10, inf  ;;  %v856_v50 = vadd.f32 %v176_v34, %v154_v28  ;;  %vm263_vm13 = vcmp.eq.f32.partialorder %v818_v10, 0.0 }
  0x3c   :  { %v592_v29 = vpop.eup %591  ;;  %v295_v33 = vmul.f32 %v590_v25, %v794_v30  ;;  %v264_v51 = vand.u32 2147483648, %v818_v10  ;;  %v860_v52 = vadd.f32 %v174_v38, %v153_v37  ;;  %v120_v55 = vmul.f32 %v72_v43, %v72_v43  ;;  %v357_v25 = vld [vmem:[%s898_s12 + $0x78] sm:$0xff] }
  0x3d   :  { %v304_v26 = vsel %vm303_vm0, %v791_v18, %v302_v17  ;;  %v288_v36 = vmul.f32 %v592_v29, %v796_v31  ;;  %v594_v18 = vpop.eup %593  ;;  %v136_v56 = vmul.f32 %v88_v44, %v88_v44  ;;  %vm254_vm14 = vcmp.eq.f32.partialorder %v826_v22, inf }
  0x3e   :  { %v307_v32 = vsel %vm305_vm1, %v306_v63, %v304_v26  ;;  %v297_v39 = vsel %vm296_vm2, %v794_v30, %v295_v33  ;;  %v281_v49 = vmul.f32 %v594_v18, %v800_v46  ;;  %v152_v0 = vmul.f32 %v104_v53, %v104_v53 }
  0x3f   :  { %v323_v35 = vadd.f32 1e-08, %v307_v32  ;;  %v300_v41 = vsel %vm298_vm3, %v299_v2, %v297_v39  ;;  %v290_v42 = vsel %vm289_vm4, %v796_v31, %v288_v36  ;;  %vm256_vm15 = vcmp.eq.f32.partialorder %v826_v22, 0.0  ;;  %v71_v2 = vld [vmem:[#allocation7 + $0x18] sm:$0xff] }
  0x40   :  { %v322_v47 = vadd.f32 1e-08, %v300_v41  ;;  %v293_v48 = vsel %vm291_vm5, %v292_v9, %v290_v42  ;;  %v596_v54 = vpop.eup %595  ;;  %v283_v31 = vsel %vm282_vm6, %v800_v46, %v281_v49  ;;  %v257_v46 = vand.u32 2147483648, %v826_v22  ;;  %v86_v9 = vld [vmem:[#allocation7 + $0x90] sm:$0xff]  ;;  %v355_v42 = vld [vmem:[%s898_s12 + $0x68] sm:$0xff] }
  0x41   :  { %605 = vrcp.f32 %v323_v35  ;;  %v321_v30 = vadd.f32 1e-08, %v293_v48  ;;  %v598_v59 = vpop.eup %597  ;;  %v286_v60 = vsel %vm284_vm7, %v285_v21, %v283_v31  ;;  %v274_v61 = vmul.f32 %v596_v54, %v805_v57  ;;  %v102_v21 = vld [vmem:[#allocation7 + $0x110] sm:$0xff]  ;;  %v389_v35 = vld [vmem:[#allocation9 + $0x78] sm:$0xff]  ;;  %v85_v48 = vld [vmem:[#allocation7 + $0x88] sm:$0xff] }
  0x42   :  { %607 = vrcp.f32 %v322_v47  ;;  %v320_v62 = vadd.f32 1e-08, %v286_v60  ;;  %v267_v63 = vmul.f32 %v598_v59, %v807_v58  ;;  %v172_v7 = vadd.f32 %v136_v56, %v120_v55  ;;  %v69_v47 = vld [vmem:[#allocation7 + $0x8] sm:$0xff] }
  0x43   :  { %609 = vrcp.f32 %v321_v30  ;;  %v276_v1 = vsel %vm275_vm8, %v805_v57, %v274_v61  ;;  %v600_v4 = vpop.eup %599  ;;  %vm247_vm0 = vcmp.eq.f32.partialorder %v828_v23, inf  ;;  %v119_v57 = vmul.f32 %v71_v2, %v71_v2  ;;  %v387_v55 = vld [vmem:[#allocation9 + $0x68] sm:$0xff]  ;;  %v354_v61 = vld [vmem:[%s898_s12 + $0x60] sm:$0xff] }
  0x44   :  { %611 = vrsqrt.f32 %v856_v50  ;;  %v279_v5 = vsel %vm277_vm9, %v278_v27, %v276_v1  ;;  %v269_v6 = vsel %vm268_vm10, %v807_v58, %v267_v63  ;;  %v260_v13 = vmul.f32 %v600_v4, %v818_v10 }
  0x45   :  { %613 = vrsqrt.f32 %v860_v52  ;;  %v319_v11 = vadd.f32 1e-08, %v279_v5  ;;  %v272_v12 = vsel %vm270_vm11, %v271_v40, %v269_v6  ;;  %v889_v16 = vadd.f32 %v172_v7, %v152_v0  ;;  %v356_v40 = vld [vmem:[%s898_s12 + $0x70] sm:$0xff] }
  0x46   :  { %615 = vrcp.f32 %v320_v62  ;;  %v318_v15 = vadd.f32 1e-08, %v272_v12  ;;  %v135_v17 = vmul.f32 %v87_v3, %v87_v3  ;;  %v602_v19 = vpop.eup %601  ;;  %v262_v20 = vsel %vm261_vm12, %v818_v10, %v260_v13  ;;  %v68_v3 = vld [vmem:[#allocation7] sm:$0xff]  ;;  %v353_v12 = vld [vmem:[%s898_s12 + $0x58] sm:$0xff] }
  0x47   :  { %617 = vrcp.f32 %v319_v11  ;;  %v118_v24 = vmul.f32 %v70_v8, %v70_v8  ;;  %v134_v58 = vmul.f32 %v86_v9, %v86_v9  ;;  %v265_v26 = vsel %vm263_vm13, %v264_v51, %v262_v20  ;;  %v604_v29 = vpop.eup %603  ;;  %v388_v51 = vld [vmem:[#allocation9 + $0x70] sm:$0xff]  ;;  %v386_v6 = vld [vmem:[#allocation9 + $0x60] sm:$0xff] }
  0x48   :  { %619 = vrcp.f32 %v318_v15  ;;  %v253_v27 = vmul.f32 %v602_v19, %v826_v22  ;;  %v151_v28 = vmul.f32 %v103_v14, %v103_v14  ;;  %v317_v32 = vadd.f32 1e-08, %v265_v26  ;;  %v84_v9 = vld [vmem:[#allocation7 + $0x80] sm:$0xff] }
  0x49   :  { %vm249_vm1 = vcmp.eq.f32.partialorder %v828_v23, 0.0  ;;  %v250_v33 = vand.u32 2147483648, %v828_v23  ;;  %621 = vrsqrt.f32 %v889_v16  ;;  %v246_v36 = vmul.f32 %v604_v29, %v828_v23  ;;  %v100_v15 = vld [vmem:[#allocation7 + $0x100] sm:$0xff] }
  0x4a   :  { %v255_v10 = vsel %vm254_vm14, %v826_v22, %v253_v27  ;;  %v170_v37 = vadd.f32 %v135_v17, %v119_v57  ;;  %v150_v38 = vmul.f32 %v102_v21, %v102_v21  ;;  %v168_v41 = vadd.f32 %v134_v58, %v118_v24 }
  0x4b   :  { %v258_v18 = vsel %vm256_vm15, %v257_v46, %v255_v10  ;;  %623 = vrcp.f32 %v317_v32  ;;  %v248_v44 = vsel %vm247_vm0, %v828_v23, %v246_v36  ;;  %vm240_vm2 = vcmp.eq.f32.partialorder %v856_v50, inf  ;;  %v101_v23 = vld [vmem:[#allocation7 + $0x108] sm:$0xff] }
  0x4c   :  { %v316_v43 = vadd.f32 1e-08, %v258_v18  ;;  %v918_v45 = vadd.f32 %v170_v37, %v151_v28  ;;  %v251_v22 = vsel %vm249_vm1, %v250_v33, %v248_v44  ;;  %v923_v53 = vadd.f32 %v168_v41, %v150_v38  ;;  %v352_v28 = vld [vmem:[%s898_s12 + $0x50] sm:$0xff] }
  0x4d   :  { %vm242_vm3 = vcmp.eq.f32.partialorder %v856_v50, 0.0  ;;  %v243_v56 = vand.u32 2147483648, %v856_v50  ;;  %vm233_vm4 = vcmp.eq.f32.partialorder %v860_v52, inf  ;;  %v117_v62 = vmul.f32 %v69_v47, %v69_v47 }
  0x4e   :  { %v606_v34 = vpop.eup %605  ;;  %625 = vrsqrt.f32 %v918_v45  ;;  %v133_v63 = vmul.f32 %v85_v48, %v85_v48  ;;  %v315_v46 = vadd.f32 1e-08, %v251_v22  ;;  %v236_v8 = vand.u32 2147483648, %v860_v52 }
  0x4f   :  { %v373_v39 = vmul.f32 %v606_v34, %v357_v25  ;;  %v608_v49 = vpop.eup %607  ;;  %627 = vrcp.f32 %v316_v43  ;;  %vm235_vm5 = vcmp.eq.f32.partialorder %v860_v52, 0.0  ;;  %v149_v14 = vmul.f32 %v101_v23, %v101_v23  ;;  %v385_v34 = vld [vmem:[#allocation9 + $0x58] sm:$0xff] }
  0x50   :  { %v610_v54 = vpop.eup %609  ;;  %v372_v31 = vmul.f32 %v608_v49, %v356_v40  ;;  %629 = vrsqrt.f32 %v923_v53  ;;  %v166_v19 = vadd.f32 %v133_v63, %v117_v62  ;;  %v116_v20 = vmul.f32 %v68_v3, %v68_v3  ;;  %v351_v40 = vld [vmem:[%s898_s12 + $0x48] sm:$0xff]  ;;  %v349_v63 = vld [vmem:[%s898_s12 + $0x38] sm:$0xff] }
  0x51   :  { %v405_v30 = vmul.f32 %v389_v35, %v373_v39  ;;  %v612_v59 = vpop.eup %611  ;;  %v371_v60 = vmul.f32 %v610_v54, %v355_v42  ;;  %631 = vrcp.f32 %v315_v46  ;;  %v132_v25 = vmul.f32 %v84_v9, %v84_v9  ;;  %v384_v42 = vld [vmem:[#allocation9 + $0x50] sm:$0xff]  ;;  %v382_v46 = vld [vmem:[#allocation9 + $0x40] sm:$0xff] }
  0x52   :  { %v614_v0 = vpop.eup %613  ;;  %v404_v1 = vmul.f32 %v388_v51, %v372_v31  ;;  %v239_v2 = vmul.f32 %v612_v59, %v856_v50  ;;  %v947_v29 = vadd.f32 %v166_v19, %v149_v14  ;;  %v148_v32 = vmul.f32 %v100_v15, %v100_v15  ;;  %v350_v31 = vld [vmem:[%s898_s12 + $0x40] sm:$0xff]  ;;  %v348_v9 = vld [vmem:[%s898_s12 + $0x30] sm:$0xff] }
  0x53   :  { %545 = vmatprep.subr.mxu0 %v405_v30  ;;  %v616_v4 = vpop.eup %615  ;;  %v403_v5 = vmul.f32 %v387_v55, %v371_v60  ;;  %v232_v7 = vmul.f32 %v614_v0, %v860_v52  ;;  %vm226_vm6 = vcmp.eq.f32.partialorder %v889_v16, inf  ;;  %v229_v35 = vand.u32 2147483648, %v889_v16 }
  0x54   :  { %546 = vmatpush3.xpose.msra.mxu0 %v405_v30  ;;  %v370_v11 = vmul.f32 %v616_v4, %v354_v61  ;;  %v241_v13 = vsel %vm240_vm2, %v856_v50, %v239_v2  ;;  %v618_v21 = vpop.eup %617  ;;  %v164_v10 = vadd.f32 %v132_v25, %v116_v20  ;;  %vm228_vm7 = vcmp.eq.f32.partialorder %v889_v16, 0.0  ;;  %v380_v20 = vld [vmem:[#allocation9 + $0x30] sm:$0xff] }
  0x55   :  { %547 = vmatprep.subr.mxu0 %v404_v1  ;;  %v244_v57 = vsel %vm242_vm3, %v243_v56, %v241_v13  ;;  %v234_v17 = vsel %vm233_vm4, %v860_v52, %v232_v7  ;;  %v620_v26 = vpop.eup %619  ;;  %v369_v27 = vmul.f32 %v618_v21, %v353_v12  ;;  %633 = vrsqrt.f32 %v947_v29  ;;  %v347_v21 = vld [vmem:[%s898_s12 + $0x28] sm:$0xff] }
  0x56   :  { %v402_v24 = vmul.f32 %v386_v6, %v370_v11  ;;  %v314_v58 = vadd.f32 1e-08, %v244_v57  ;;  %v237_v50 = vsel %vm235_vm5, %v236_v8, %v234_v17  ;;  %v622_v33 = vpop.eup %621  ;;  %v368_v37 = vmul.f32 %v620_v26, %v352_v28 }
  0x57   :  { %v225_v36 = vmul.f32 %v622_v33, %v889_v16  ;;  %v313_v38 = vadd.f32 1e-08, %v237_v50  ;;  %v401_v39 = vmul.f32 %v385_v34, %v369_v27  ;;  %v956_v41 = vadd.f32 %v164_v10, %v148_v32  ;;  %v346_v32 = vld [vmem:[%s898_s12 + $0x20] sm:$0xff]  ;;  %v378_v10 = vld [vmem:[#allocation9 + $0x20] sm:$0xff] }
  0x58   :  { %548 = vmatpush3.xpose.msra.mxu0 %v404_v1  ;;  %v624_v52 = vpop.eup %623  ;;  %635 = vrcp.f32 %v314_v58  ;;  %vm219_vm8 = vcmp.eq.f32.partialorder %v918_v45, inf  ;;  %vm221_vm9 = vcmp.eq.f32.partialorder %v918_v45, 0.0  ;;  %v222_v48 = vand.u32 2147483648, %v918_v45 }
  0x59   :  { %549 = vmatprep.subr.mxu0 %v403_v5  ;;  %v227_v18 = vsel %vm226_vm6, %v889_v16, %v225_v36  ;;  %637 = vrsqrt.f32 %v956_v41  ;;  %v367_v47 = vmul.f32 %v624_v52, %v351_v40  ;;  %v400_v30 = vmul.f32 %v384_v42, %v368_v37  ;;  %v383_v16 = vld [vmem:[#allocation9 + $0x48] sm:$0xff]  ;;  %v344_v40 = vld [vmem:[%s898_s12 + $0x10] sm:$0xff] }
  0x5a   :  { %v230_v43 = vsel %vm228_vm7, %v229_v35, %v227_v18  ;;  %639 = vrcp.f32 %v313_v38  ;;  %vm212_vm10 = vcmp.eq.f32.partialorder %v923_v53, inf  ;;  %v215_v55 = vand.u32 2147483648, %v923_v53  ;;  %v345_v36 = vld [vmem:[%s898_s12 + $0x18] sm:$0xff] }
  0x5b   :  { %v626_v44 = vpop.eup %625  ;;  %v312_v51 = vadd.f32 1e-08, %v230_v43  ;;  %vm214_vm11 = vcmp.eq.f32.partialorder %v923_v53, 0.0  ;;  %v399_v60 = vmul.f32 %v383_v16, %v367_v47  ;;  %vm205_vm12 = vcmp.eq.f32.partialorder %v947_v29, inf  ;;  %v376_v43 = vld [vmem:[#allocation9 + $0x10] sm:$0xff] }
  0x5c   :  { %550 = vmatpush3.xpose.msra.mxu0 %v403_v5  ;;  %v628_v49 = vpop.eup %627  ;;  %v218_v22 = vmul.f32 %v626_v44, %v918_v45  ;;  %v208_v7 = vand.u32 2147483648, %v947_v29  ;;  %vm207_vm13 = vcmp.eq.f32.partialorder %v947_v29, 0.0  ;;  %vm198_vm14 = vcmp.eq.f32.partialorder %v956_v41, inf  ;;  %v343_v44 = vld [vmem:[%s898_s12 + $0x8] sm:$0xff]  ;;  %v342_v16 = vld [vmem:[%s898_s12] sm:$0xff] }
  0x5d   :  { %551 = vmatprep.subr.mxu0 %v402_v24  ;;  %v630_v54 = vpop.eup %629  ;;  %v366_v62 = vmul.f32 %v628_v49, %v350_v31  ;;  %641 = vrcp.f32 %v312_v51  ;;  %vm200_vm15 = vcmp.eq.f32.partialorder %v956_v41, 0.0  ;;  %v201_v14 = vand.u32 2147483648, %v956_v41 }
  0x5e   :  { %v220_v56 = vsel %vm219_vm8, %v918_v45, %v218_v22  ;;  %v211_v59 = vmul.f32 %v630_v54, %v923_v53  ;;  %v632_v23 = vpop.eup %631  ;;  %v381_v45 = vld [vmem:[#allocation9 + $0x38] sm:$0xff]  ;;  %v374_v54 = vld [vmem:[#allocation9] sm:$0xff] }
  0x5f   :  { %v223_v61 = vsel %vm221_vm9, %v222_v48, %v220_v56  ;;  %v365_v3 = vmul.f32 %v632_v23, %v349_v63  ;;  %v398_v5 = vmul.f32 %v382_v46, %v366_v62 }
  0x60   :  { %552 = vmatpush3.xpose.msra.mxu0 %v402_v24  ;;  %v311_v0 = vadd.f32 1e-08, %v223_v61  ;;  %v213_v1 = vsel %vm212_vm10, %v923_v53, %v211_v59  ;;  %v526_v59 = vld [vmem:[%s1007_s4] ss:$0 sm:$0xff] }
  0x61   :  { %553 = vmatprep.subr.mxu0 %v401_v39  ;;  %v216_v2 = vsel %vm214_vm11, %v215_v55, %v213_v1  ;;  %v397_v12 = vmul.f32 %v381_v45, %v365_v3  ;;  %v407_v55 = vld [vmem:[#allocation4 + $0x8] sm:$0xff] }
  0x62   :  { %v634_v4 = vpop.eup %633  ;;  %643 = vrcp.f32 %v311_v0  ;;  %v310_v6 = vadd.f32 1e-08, %v216_v2 }
  0x63   :  { %v204_v11 = vmul.f32 %v634_v4, %v947_v29 }
  0x64   :  { %554 = vmatpush3.xpose.msra.mxu0 %v401_v39  ;;  %645 = vrcp.f32 %v310_v6  ;;  %v377_v39 = vld [vmem:[#allocation9 + $0x18] sm:$0xff] }
  0x65   :  { %555 = vmatprep.subr.mxu0 %v400_v30  ;;  %v636_v8 = vpop.eup %635  ;;  %v206_v13 = vsel %vm205_vm12, %v947_v29, %v204_v11  ;;  %v379_v29 = vld [vmem:[#allocation9 + $0x28] sm:$0xff] }
  0x66   :  { %v638_v53 = vpop.eup %637  ;;  %v364_v15 = vmul.f32 %v636_v8, %v348_v9  ;;  %v209_v57 = vsel %vm207_vm13, %v208_v7, %v206_v13 }
  0x67   :  { %v197_v17 = vmul.f32 %v638_v53, %v956_v41  ;;  %v640_v19 = vpop.eup %639  ;;  %v309_v24 = vadd.f32 1e-08, %v209_v57 }
  0x68   :  { %556 = vmatpush3.xpose.msra.mxu0 %v400_v30  ;;  %v396_v26 = vmul.f32 %v380_v20, %v364_v15  ;;  %v363_v27 = vmul.f32 %v640_v19, %v347_v21  ;;  %v375_v30 = vld [vmem:[#allocation9 + $0x8] sm:$0xff] }
  0x69   :  { %557 = vmatprep.subr.mxu0 %v399_v60  ;;  %v199_v58 = vsel %vm198_vm14, %v956_v41, %v197_v17  ;;  %647 = vrcp.f32 %v309_v24 }
  0x6a   :  { %v202_v25 = vsel %vm200_vm15, %v201_v14, %v199_v58  ;;  %v642_v50 = vpop.eup %641  ;;  %v395_v33 = vmul.f32 %v379_v29, %v363_v27 }
  0x6b   :  { %v308_v28 = vadd.f32 1e-08, %v202_v25  ;;  %v362_v34 = vmul.f32 %v642_v50, %v346_v32 }
  0x6c   :  { %558 = vmatpush3.xpose.msra.mxu0 %v399_v60 }
  0x6d   :  { %559 = vmatprep.subr.mxu0 %v398_v5  ;;  %649 = vrcp.f32 %v308_v28  ;;  %v394_v37 = vmul.f32 %v378_v10, %v362_v34 }
  0x6f   :  { %v644_v35 = vpop.eup %643 }
  0x70   :  { %560 = vmatpush3.xpose.msra.mxu0 %v398_v5  ;;  %v361_v38 = vmul.f32 %v644_v35, %v345_v36 }
  0x71   :  { %561 = vmatprep.subr.mxu0 %v397_v12  ;;  %v646_v52 = vpop.eup %645 }
  0x72   :  { %v393_v18 = vmul.f32 %v377_v39, %v361_v38  ;;  %v360_v41 = vmul.f32 %v646_v52, %v344_v40 }
  0x74   :  { %562 = vmatpush3.xpose.msra.mxu0 %v397_v12  ;;  %v392_v47 = vmul.f32 %v376_v43, %v360_v41 }
  0x75   :  { %563 = vmatprep.subr.mxu0 %v396_v26 }
  0x76   :  { %v648_v42 = vpop.eup %647 }
  0x77   :  { %v359_v48 = vmul.f32 %v648_v42, %v343_v44 }
  0x78   :  { %564 = vmatpush3.xpose.msra.mxu0 %v396_v26 }
  0x79   :  { %565 = vmatprep.subr.mxu0 %v395_v33  ;;  %v391_v51 = vmul.f32 %v375_v30, %v359_v48 }
  0x7a   :  { %v650_v49 = vpop.eup %649 }
  0x7b   :  { %v358_v22 = vmul.f32 %v650_v49, %v342_v16 }
  0x7c   :  { %566 = vmatpush3.xpose.msra.mxu0 %v395_v33 }
  0x7d   :  { %567 = vmatprep.subr.mxu0 %v394_v37  ;;  %v390_v31 = vmul.f32 %v374_v54, %v358_v22 }
  0x80   :  { %568 = vmatpush3.xpose.msra.mxu0 %v394_v37 }
  0x81   :  { %569 = vmatprep.subr.mxu0 %v393_v18 }
  0x84   :  { %570 = vmatpush3.xpose.msra.mxu0 %v393_v18 }
  0x85   :  { %571 = vmatprep.subr.mxu0 %v392_v47 }
  0x88   :  { %572 = vmatpush3.xpose.msra.mxu0 %v392_v47 }
  0x89   :  { %573 = vmatprep.subr.mxu0 %v391_v51 }
  0x8c   :  { %574 = vmatpush3.xpose.msra.mxu0 %v391_v51 }
  0x8d   :  { %575 = vmatprep.subr.mxu0 %v390_v31 }
  0x90   :  { %576 = vmatpush3.xpose.msra.mxu0 %v390_v31 }
  0x93   :  { %578 = vmatmul.mubr.f32.vlgmr.msra.gmra.mxu0 %v407_v55 }
 0x153   :  { %v579_v56 = vpop.f32.mrf.mxu0 }
 0x154   :  { %v502_v61 = vadd.f32 %v579_v56, %v526_v59 }
 0x155   :  { %v476_v60 = vpop.f32.mrf.mxu0 }
 0x156   :  { %v501_v23 = vadd.f32 %v526_v59, %v476_v60  ;;  %504 = vst [vmem:[#allocation10 + $0x8] sm:$0xff] %v502_v61 }
 0x158   :  { %503 = vst [vmem:[#allocation10] sm:$0xff] %v501_v23 }
 0x159   :  { %722 = shalt.err (!%p719_p5)
}
 0x15a   :  { %516 = dma.vmem_to_hbm [thread:$0]  %s511_s15, 256, %s1008_s5, [#allocation6], %s739_s23, %s739_s23, %s740_s24  }
 0x15b   :  { %735 = dma.done.wait [#allocation6], 256  }
 0x15c   :  { %736 = vsyncadd [#allocation6], 4294967040 }
 0x15d   :  { %520 = vsyncpa [#allocation5], 1 }
 0x15e   :  { %521 = vsyncpa [#allocation8], 1 }
 0x15f   :  { %522 = vsyncpa [#allocation6], 1 }

</bundles_post_ra>
